<compile_context>
chip_gen: v6e
topology: v6e:2x2x1
jax: 0.10.0
libtpu: 0.0.40
codegen_flags: <defaults>
</compile_context>

<pallas_src>
import jax
import jax.numpy as jnp
from jax.experimental import pallas as pl
from jax.experimental.pallas import tpu as pltpu

THRESHOLD = 1.0   # snn.Leaky default
TM_MAX = 512      # max batch rows per grid step (f32 x tile @512 is only 2 MiB)


def _round_up(n, m):
    return ((n + m - 1) // m) * m


def _cdiv(a, b):
    return -(-a // b)


# ---------------------------------------------------------------------------
# Kernel: one batch tile of the fused MLP + LIF thresholding.
# x arrives in f32 (native HBM dtype) and is cast to bf16 on-core; weights and
# biases are VMEM-resident (constant index_map); activations stream per tile.
# ---------------------------------------------------------------------------
def _mlp_lif_kernel(x_ref, w1_ref, b1_ref, w2_ref, b2_ref, w3_ref, b3_ref,
                    mem_ref):
    # In-kernel cast: saves a full wrapper-side pad/cast pass over x.
    x_bf16 = x_ref[...].astype(jnp.bfloat16)

    # fc1: (TM, Kp) bf16 @ (Kp, Hp) bf16 -> f32 accumulate on the MXU.
    cur1 = jnp.dot(x_bf16, w1_ref[...],
                   preferred_element_type=jnp.float32) + b1_ref[...]
    spk1 = (cur1 > THRESHOLD).astype(jnp.bfloat16)   # 0/1 exact in bf16

    cur2 = jnp.dot(spk1, w2_ref[...],
                   preferred_element_type=jnp.float32) + b2_ref[...]
    spk2 = (cur2 > THRESHOLD).astype(jnp.bfloat16)

    # mem3 == cur3 for a zero-initialized single LIF step; spk3 is derived in
    # the wrapper to keep the kernel's output lane-dense and halve output DMA.
    mem_ref[...] = jnp.dot(spk2, w3_ref[...],
                           preferred_element_type=jnp.float32) + b3_ref[...]


# ---------------------------------------------------------------------------
# Parameter init / prep: pad every width to a multiple of 128 lanes, cast
# weights to bf16 (MXU-native).  Zero padding guarantees padded hidden units
# never spike, so numerics are unchanged after slicing.
# ---------------------------------------------------------------------------
def init_params(key, input_size, hidden_size, output_size):
    """PyTorch-Linear-style init: U(-1/sqrt(fan_in), 1/sqrt(fan_in)); layout (in, out)."""
    def linear(key, fan_in, fan_out):
        kw, kb = jax.random.split(key)
        bound = 1.0 / jnp.sqrt(fan_in)
        w = jax.random.uniform(kw, (fan_in, fan_out), jnp.float32, -bound, bound)
        b = jax.random.uniform(kb, (1, fan_out), jnp.float32, -bound, bound)
        return w, b

    k1, k2, k3 = jax.random.split(key, 3)
    w1, b1 = linear(k1, input_size, hidden_size)
    w2, b2 = linear(k2, hidden_size, hidden_size)
    w3, b3 = linear(k3, hidden_size, output_size)
    return (w1, b1, w2, b2, w3, b3)


def prepare_params(params, input_size, hidden_size, output_size):
    w1, b1, w2, b2, w3, b3 = params
    kp = _round_up(input_size, 128)
    hp = _round_up(hidden_size, 128)
    op = _round_up(output_size, 128)

    def pad2(a, rows, cols):
        return jnp.pad(a, ((0, rows - a.shape[0]), (0, cols - a.shape[1])))

    w1p = pad2(w1, kp, hp).astype(jnp.bfloat16)
    b1p = pad2(b1, 1, hp).astype(jnp.float32)
    w2p = pad2(w2, hp, hp).astype(jnp.bfloat16)
    b2p = pad2(b2, 1, hp).astype(jnp.float32)
    w3p = pad2(w3, hp, op).astype(jnp.bfloat16)
    b3p = pad2(b3, 1, op).astype(jnp.float32)
    return (w1p, b1p, w2p, b2p, w3p, b3p)


# ---------------------------------------------------------------------------
# Forward wrapper: flatten NCHW, pick batch tiling, run the kernel, slice back
# to logical shapes, derive spk3.
# ---------------------------------------------------------------------------
def multimodal_integration_forward(x_nchw, prepared_params, output_size):
    w1, b1, w2, b2, w3, b3 = prepared_params
    k_pad, h_pad = w1.shape
    o_pad = w3.shape[1]

    B = x_nchw.shape[0]
    x_flat = x_nchw.astype(jnp.float32).reshape(B, -1)      # nn.Flatten
    k = x_flat.shape[1]

    # Tile selection: minimize padding waste (tm adapted to B, multiple of 8),
    # cap per-step rows at TM_MAX, and keep >=2 grid steps when B allows so
    # the "parallel" batch axis can shard across v7x's two TensorCores.
    n_tiles = max(1, _cdiv(B, TM_MAX))
    if n_tiles == 1 and B > 8:
        n_tiles = 2
    tm = _round_up(_cdiv(B, n_tiles), 8)
    b_pad = n_tiles * tm
    grid = (n_tiles,)

    # x stays f32 end-to-end (cast to bf16 happens inside the kernel); only pad
    # when strictly required so the common case is a zero-copy hand-off.
    if (b_pad != B) or (k_pad != k):
        x_in = jnp.pad(x_flat, ((0, b_pad - B), (0, k_pad - k)))
    else:
        x_in = x_flat

    weight_bytes = (w1.size + w2.size + w3.size) * 2        # bf16 resident
    bias_bytes = (b1.size + b2.size + b3.size) * 4          # f32 resident
    flops = 2 * b_pad * (k_pad * h_pad + h_pad * h_pad + h_pad * o_pad)
    bytes_accessed = (b_pad * k_pad * 4                      # f32 activations in
                      + weight_bytes + bias_bytes
                      + b_pad * o_pad * 4)                   # f32 mem3 out

    # Explicit VMEM budget (conservative: everything counted double-buffered),
    # clamped to v7x's 64 MiB physical VMEM.  Avoids silent spills when
    # input_size / hidden_size grow while staying valid on v5e/v6e (128 MiB).
    vmem_need = (2 * tm * k_pad * 4            # x tile, double-buffered, f32
                 + 2 * tm * o_pad * 4          # out tile, double-buffered, f32
                 + 2 * (weight_bytes + bias_bytes))
    vmem_limit = int(min(64 << 20, max(16 << 20, 2 * vmem_need)))

    mem_pad = pl.pallas_call(
        _mlp_lif_kernel,
        out_shape=jax.ShapeDtypeStruct((b_pad, o_pad), jnp.float32),
        grid=grid,
        in_specs=[
            pl.BlockSpec((tm, k_pad), lambda i: (i, 0)),       # x: streamed per tile (f32)
            pl.BlockSpec((k_pad, h_pad), lambda i: (0, 0)),    # w1: resident
            pl.BlockSpec((1, h_pad), lambda i: (0, 0)),        # b1: resident
            pl.BlockSpec((h_pad, h_pad), lambda i: (0, 0)),    # w2: resident
            pl.BlockSpec((1, h_pad), lambda i: (0, 0)),        # b2: resident
            pl.BlockSpec((h_pad, o_pad), lambda i: (0, 0)),    # w3: resident
            pl.BlockSpec((1, o_pad), lambda i: (0, 0)),        # b3: resident
        ],
        out_specs=pl.BlockSpec((tm, o_pad), lambda i: (i, 0)),  # lane-dense store
        compiler_params=pltpu.CompilerParams(
            dimension_semantics=("parallel",),                  # v7x dual-TC sharding
            vmem_limit_bytes=vmem_limit),
        cost_estimate=pl.CostEstimate(
            flops=flops, transcendentals=0, bytes_accessed=bytes_accessed),
    )(x_in, w1, b1, w2, b2, w3, b3)

    mem3 = mem_pad[:B, :output_size]
    spk3 = (mem3 > THRESHOLD).astype(jnp.float32)
    return spk3, mem3


# ---------------------------------------------------------------------------
# Pure-JAX reference with identical operand quantization (bf16 x / weights,
# exact f32 accumulation) so the comparison isolates kernel correctness.
# ---------------------------------------------------------------------------
def _reference_forward(x_nchw, prepared_params, output_size):
    w1, b1, w2, b2, w3, b3 = prepared_params
    k_pad = w1.shape[0]
    B = x_nchw.shape[0]
    x = x_nchw.astype(jnp.float32).reshape(B, -1)
    x = jnp.pad(x, ((0, 0), (0, k_pad - x.shape[1])))
    x = x.astype(jnp.bfloat16).astype(jnp.float32)

    hi = jax.lax.Precision.HIGHEST
    cur1 = jnp.dot(x, w1.astype(jnp.float32), precision=hi) + b1
    spk1 = (cur1 > THRESHOLD).astype(jnp.float32)
    cur2 = jnp.dot(spk1, w2.astype(jnp.float32), precision=hi) + b2
    spk2 = (cur2 > THRESHOLD).astype(jnp.float32)
    cur3 = jnp.dot(spk2, w3.astype(jnp.float32), precision=hi) + b3
    spk3 = (cur3 > THRESHOLD).astype(jnp.float32)
    return spk3[:, :output_size], cur3[:, :output_size]


if __name__ == "__main__":
    # Small shapes consistent with the module: NCHW feature map flattened into
    # fc1.  input_size = C*H*W = 4*16*16 = 1024.
    B, C, H, W = 2, 4, 16, 16
    input_size = C * H * W
    hidden_size = 32
    output_size = 16
    beta = 0.9  # no numerical effect: single step with zero-initialized membranes

    key = jax.random.PRNGKey(0)
    kx, kp = jax.random.split(key)
    x = jax.random.normal(kx, (B, C, H, W), jnp.float32) * 2.0
    params = init_params(kp, input_size, hidden_size, output_size)
    prepared = prepare_params(params, input_size, hidden_size, output_size)

    spk3, mem3 = multimodal_integration_forward(x, prepared, output_size)
    jax.block_until_ready((spk3, mem3))

    # Correctness check against the (identically-quantized) pure-JAX reference.
    ref_spk, ref_mem = _reference_forward(x, prepared, output_size)
    assert spk3.shape == (B, output_size) and mem3.shape == (B, output_size)
    assert jnp.allclose(mem3, ref_mem, atol=1e-3, rtol=1e-3), "mem3 mismatch"
    assert jnp.array_equal(spk3, ref_spk), "spk3 mismatch"
    assert jnp.array_equal(spk3, (mem3 > THRESHOLD).astype(jnp.float32))

    print("KERNEL_OK")
</pallas_src>

<mosaic_0001>
module attributes {stable_mosaic.version = 11 : i64} {
  func.func @_mlp_lif_kernel(%arg0: i32, %arg1: memref<8x1024xf32, #tpu.memory_space<vmem>>, %arg2: memref<1024x128xbf16, #tpu.memory_space<vmem>>, %arg3: memref<1x128xf32, #tpu.memory_space<vmem>>, %arg4: memref<128x128xbf16, #tpu.memory_space<vmem>>, %arg5: memref<1x128xf32, #tpu.memory_space<vmem>>, %arg6: memref<128x128xbf16, #tpu.memory_space<vmem>>, %arg7: memref<1x128xf32, #tpu.memory_space<vmem>>, %arg8: memref<8x128xf32, #tpu.memory_space<vmem>>) attributes {dimension_semantics = [#tpu.dimension_semantics<parallel>], iteration_bounds = array<i64: 1>, scalar_prefetch = 0 : i64, scratch_operands = 0 : i64, tpu.core_type = #tpu.core_type<tc>, window_params = [{transform_indices = @transform_0, window_bounds = array<i64: 8, 1024>}, {pipeline_mode = #tpu.pipeline_mode<synchronous>, transform_indices = @transform_1, window_bounds = array<i64: 1024, 128>}, {pipeline_mode = #tpu.pipeline_mode<synchronous>, transform_indices = @transform_2, window_bounds = array<i64: 1, 128>}, {pipeline_mode = #tpu.pipeline_mode<synchronous>, transform_indices = @transform_3, window_bounds = array<i64: 128, 128>}, {pipeline_mode = #tpu.pipeline_mode<synchronous>, transform_indices = @transform_4, window_bounds = array<i64: 1, 128>}, {pipeline_mode = #tpu.pipeline_mode<synchronous>, transform_indices = @transform_5, window_bounds = array<i64: 128, 128>}, {pipeline_mode = #tpu.pipeline_mode<synchronous>, transform_indices = @transform_6, window_bounds = array<i64: 1, 128>}, {transform_indices = @transform_7, window_bounds = array<i64: 8, 128>}]} {
    %c0 = arith.constant 0 : index
    %c0_0 = arith.constant 0 : index
    %0 = vector.load %arg1[%c0, %c0_0] : memref<8x1024xf32, #tpu.memory_space<vmem>>, vector<8x1024xf32>
    %1 = arith.truncf %0 : vector<8x1024xf32> to vector<8x1024xbf16>
    %c0_1 = arith.constant 0 : index
    %c0_2 = arith.constant 0 : index
    %2 = vector.load %arg2[%c0_1, %c0_2] : memref<1024x128xbf16, #tpu.memory_space<vmem>>, vector<1024x128xbf16>
    %cst = arith.constant dense<0.000000e+00> : vector<8x128xf32>
    %3 = tpu.matmul %1, %2, %cst {dimension_numbers = #tpu.dot_dimension_numbers<[1], [0], [0], [1], [0, 0, 1, 1], [], []>} : vector<8x1024xbf16>, vector<1024x128xbf16>, vector<8x128xf32> -> vector<8x128xf32>
    %c0_3 = arith.constant 0 : index
    %c0_4 = arith.constant 0 : index
    %4 = vector.load %arg3[%c0_3, %c0_4] : memref<1x128xf32, #tpu.memory_space<vmem>>, vector<1x128xf32>
    %5 = vector.broadcast %4 : vector<1x128xf32> to vector<8x128xf32>
    %6 = arith.addf %3, %5 : vector<8x128xf32>
    %cst_5 = arith.constant 1.000000e+00 : f32
    %7 = vector.broadcast %cst_5 : f32 to vector<8x128xf32>
    %8 = arith.cmpf ogt, %6, %7 : vector<8x128xf32>
    %9 = arith.extui %8 : vector<8x128xi1> to vector<8x128xi32>
    %10 = arith.sitofp %9 : vector<8x128xi32> to vector<8x128xf32>
    %11 = arith.truncf %10 : vector<8x128xf32> to vector<8x128xbf16>
    %c0_6 = arith.constant 0 : index
    %c0_7 = arith.constant 0 : index
    %12 = vector.load %arg4[%c0_6, %c0_7] : memref<128x128xbf16, #tpu.memory_space<vmem>>, vector<128x128xbf16>
    %cst_8 = arith.constant dense<0.000000e+00> : vector<8x128xf32>
    %13 = tpu.matmul %11, %12, %cst_8 {dimension_numbers = #tpu.dot_dimension_numbers<[1], [0], [0], [1], [0, 0, 1, 1], [], []>} : vector<8x128xbf16>, vector<128x128xbf16>, vector<8x128xf32> -> vector<8x128xf32>
    %c0_9 = arith.constant 0 : index
    %c0_10 = arith.constant 0 : index
    %14 = vector.load %arg5[%c0_9, %c0_10] : memref<1x128xf32, #tpu.memory_space<vmem>>, vector<1x128xf32>
    %15 = vector.broadcast %14 : vector<1x128xf32> to vector<8x128xf32>
    %16 = arith.addf %13, %15 : vector<8x128xf32>
    %cst_11 = arith.constant 1.000000e+00 : f32
    %17 = vector.broadcast %cst_11 : f32 to vector<8x128xf32>
    %18 = arith.cmpf ogt, %16, %17 : vector<8x128xf32>
    %19 = arith.extui %18 : vector<8x128xi1> to vector<8x128xi32>
    %20 = arith.sitofp %19 : vector<8x128xi32> to vector<8x128xf32>
    %21 = arith.truncf %20 : vector<8x128xf32> to vector<8x128xbf16>
    %c0_12 = arith.constant 0 : index
    %c0_13 = arith.constant 0 : index
    %22 = vector.load %arg6[%c0_12, %c0_13] : memref<128x128xbf16, #tpu.memory_space<vmem>>, vector<128x128xbf16>
    %cst_14 = arith.constant dense<0.000000e+00> : vector<8x128xf32>
    %23 = tpu.matmul %21, %22, %cst_14 {dimension_numbers = #tpu.dot_dimension_numbers<[1], [0], [0], [1], [0, 0, 1, 1], [], []>} : vector<8x128xbf16>, vector<128x128xbf16>, vector<8x128xf32> -> vector<8x128xf32>
    %c0_15 = arith.constant 0 : index
    %c0_16 = arith.constant 0 : index
    %24 = vector.load %arg7[%c0_15, %c0_16] : memref<1x128xf32, #tpu.memory_space<vmem>>, vector<1x128xf32>
    %25 = vector.broadcast %24 : vector<1x128xf32> to vector<8x128xf32>
    %26 = arith.addf %23, %25 : vector<8x128xf32>
    %c0_17 = arith.constant 0 : index
    %c0_18 = arith.constant 0 : index
    %27 = vector.load %arg8[%c0_17, %c0_18] : memref<8x128xf32, #tpu.memory_space<vmem>>, vector<8x128xf32>
    tpu.vector_store %arg8[%c0_17, %c0_18], %26 {strides = array<i32>} : memref<8x128xf32, #tpu.memory_space<vmem>>, vector<8x128xf32>,
    return
  }
  func.func @transform_0(%arg0: i32) -> (i32, i32) {
    %c0_i32 = arith.constant 0 : i32
    %c0_i32_0 = arith.constant 0 : i32
    return %arg0, %c0_i32 : i32, i32
  }
  func.func @transform_1(%arg0: i32) -> (i32, i32) {
    %c0_i32 = arith.constant 0 : i32
    %c0_i32_0 = arith.constant 0 : i32
    %c0_i32_1 = arith.constant 0 : i32
    return %c0_i32, %c0_i32_0 : i32, i32
  }
  func.func @transform_2(%arg0: i32) -> (i32, i32) {
    %c0_i32 = arith.constant 0 : i32
    %c0_i32_0 = arith.constant 0 : i32
    %c0_i32_1 = arith.constant 0 : i32
    return %c0_i32, %c0_i32_0 : i32, i32
  }
  func.func @transform_3(%arg0: i32) -> (i32, i32) {
    %c0_i32 = arith.constant 0 : i32
    %c0_i32_0 = arith.constant 0 : i32
    %c0_i32_1 = arith.constant 0 : i32
    return %c0_i32, %c0_i32_0 : i32, i32
  }
  func.func @transform_4(%arg0: i32) -> (i32, i32) {
    %c0_i32 = arith.constant 0 : i32
    %c0_i32_0 = arith.constant 0 : i32
    %c0_i32_1 = arith.constant 0 : i32
    return %c0_i32, %c0_i32_0 : i32, i32
  }
  func.func @transform_5(%arg0: i32) -> (i32, i32) {
    %c0_i32 = arith.constant 0 : i32
    %c0_i32_0 = arith.constant 0 : i32
    %c0_i32_1 = arith.constant 0 : i32
    return %c0_i32, %c0_i32_0 : i32, i32
  }
  func.func @transform_6(%arg0: i32) -> (i32, i32) {
    %c0_i32 = arith.constant 0 : i32
    %c0_i32_0 = arith.constant 0 : i32
    %c0_i32_1 = arith.constant 0 : i32
    return %c0_i32, %c0_i32_0 : i32, i32
  }
  func.func @transform_7(%arg0: i32) -> (i32, i32) {
    %c0_i32 = arith.constant 0 : i32
    %c0_i32_0 = arith.constant 0 : i32
    return %arg0, %c0_i32 : i32, i32
  }
}

</mosaic_0001>

<bundles_post_ra>
// kernel: tpu_custom_call.1
= control target key start
LH: loop header
LB: loop body
LE: loop exit
PB: predicated region body
PF: predicated region fallthrough
CT: control target
= control target key end

     0   :  { %12 = vsyncpa [#allocation3], 0  ;;  %s1540_s0 = inlined_call_operand.hbm [shape: f32[8,1024], index: 0, kind: input, shape index: {}]   ;;  %s1541_s1 = inlined_call_operand.hbm [shape: bf16[1024,128], index: 1, kind: input, shape index: {}]   ;;  %s1542_s2 = inlined_call_operand.vmem [shape: f32[1,128], index: 2, kind: input, shape index: {}]   ;;  %s1543_s3 = inlined_call_operand.hbm [shape: bf16[128,128], index: 3, kind: input, shape index: {}]   ;;  %s1544_s4 = inlined_call_operand.vmem [shape: f32[1,128], index: 4, kind: input, shape index: {}]   ;;  %s1545_s5 = inlined_call_operand.hbm [shape: bf16[128,128], index: 5, kind: input, shape index: {}]   ;;  %s1546_s6 = inlined_call_operand.vmem [shape: f32[1,128], index: 6, kind: input, shape index: {}]   ;;  %s1547_s7 = inlined_call_operand.hbm [shape: f32[8,128], index: 7, kind: output, shape index: {}]  }
   0x1   :  { %13 = vsyncpa [#allocation6], 0 }
   0x2   :  { %14 = vsyncpa [#allocation9], 0 }
   0x3   :  { %15 = vsyncpa [#allocation4], 0  ;;  %s1457_s24 = smov [#allocation5]  }
   0x4   :  { %s31_s25 = sshll.u32 %s1457_s24, 4  ;;  %s32_s25 = int_to_ptr.vmem [resolvable:$true] %s31_s25 }
   0x5   :  { %s1357_s26 = scalar_lea.vmem %s32_s25, 8192  ;;  %p1362_p1 = scmp.lt.s32.totalorder %s32_s25, %s32_s25 }
   0x6   :  { %p1358_p0 = scmp.ne.s32.totalorder %s32_s25, %s1357_s26  ;;  %p1363_p2 = scmp.lt.s32.totalorder %s1357_s26, %s1357_s26 }
   0x8   :  { %p1364_p3 = por %p1363_p2, %p1362_p1 }
   0xa   :  { %p1365_p4 = pnand %p1364_p3, %p1358_p0 }
   0xc   :  { %1368 = shalt.err (!%p1365_p4)
}
   0xd   :  { %s1458_s27 = smov 64   ;;  %s1459_s28 = smov 4  }
   0xe   :  { %37 = dma.hbm_to_vmem [thread:$0]  %s1541_s1, 8192, %s32_s25, [#allocation6], %s1458_s27, %s1458_s27, %s1459_s28  }
   0xf   :  { %s1460_s8 = smov [#allocation2]   ;;  %s1461_s10 = smov [#allocation7]  }
  0x10   :  { %s22_s9 = sshll.u32 %s1460_s8, 4  ;;  %s45_s11 = sshll.u32 %s1461_s10, 4  ;;  %s23_s9 = int_to_ptr.vmem [resolvable:$true] %s22_s9  ;;  %s46_s11 = int_to_ptr.vmem [resolvable:$true] %s45_s11 }
  0x11   :  { %s1377_s12 = scalar_lea.vmem %s23_s9, 1024  ;;  %p1382_p6 = scmp.lt.s32.totalorder %s23_s9, %s23_s9 }
  0x12   :  { %p1378_p5 = scmp.ne.s32.totalorder %s23_s9, %s1377_s12  ;;  %p1383_p7 = scmp.lt.s32.totalorder %s1377_s12, %s1377_s12 }
  0x14   :  { %p1384_p8 = por %p1383_p7, %p1382_p6 }
  0x16   :  { %p1385_p9 = pnand %p1384_p8, %p1378_p5 }
  0x18   :  { %1388 = shalt.err (!%p1385_p9)
}
  0x19   :  { %25 = dma.hbm_to_vmem [thread:$0]  %s1540_s0, 1024, %s23_s9, [#allocation3]  }
  0x1a   :  { %s1397_s15 = scalar_lea.vmem %s46_s11, 1024  ;;  %p1402_p11 = scmp.lt.s32.totalorder %s46_s11, %s46_s11 }
  0x1b   :  { %p1398_p10 = scmp.ne.s32.totalorder %s46_s11, %s1397_s15  ;;  %p1403_p12 = scmp.lt.s32.totalorder %s1397_s15, %s1397_s15 }
  0x1d   :  { %p1404_p13 = por %p1403_p12, %p1402_p11 }
  0x1f   :  { %p1405_p0 = pnand %p1404_p13, %p1398_p10 }
  0x21   :  { %1408 = shalt.err (!%p1405_p0)
}
  0x22   :  { %51 = dma.hbm_to_vmem [thread:$0]  %s1543_s3, 1024, %s46_s11, [#allocation6], %s1458_s27, %s1458_s27, %s1459_s28  }
  0x23   :  { %s1462_s17 = smov [#allocation8]  }
  0x24   :  { %s59_s18 = sshll.u32 %s1462_s17, 4  ;;  %s60_s18 = int_to_ptr.vmem [resolvable:$true] %s59_s18 }
  0x25   :  { %s1417_s19 = scalar_lea.vmem %s60_s18, 1024  ;;  %p1422_p2 = scmp.lt.s32.totalorder %s60_s18, %s60_s18 }
  0x26   :  { %p1418_p1 = scmp.ne.s32.totalorder %s60_s18, %s1417_s19  ;;  %p1423_p3 = scmp.lt.s32.totalorder %s1417_s19, %s1417_s19 }
  0x28   :  { %p1424_p4 = por %p1423_p3, %p1422_p2 }
  0x2a   :  { %p1425_p5 = pnand %p1424_p4, %p1418_p1 }
  0x2c   :  { %1428 = shalt.err (!%p1425_p5)
}
  0x2d   :  { %65 = dma.hbm_to_vmem [thread:$0]  %s1545_s5, 1024, %s60_s18, [#allocation9], %s1458_s27, %s1458_s27, %s1459_s28  }
  0x2e   :  { %1449 = dma.done.wait [#allocation3], 1024  }
  0x2f   :  { %1450 = vsyncadd [#allocation3], 4294966272 }
  0x30   :  { %1451 = dma.done.wait [#allocation6], 9216  }
  0x31   :  { %1452 = vsyncadd [#allocation6], 4294958080 }
  0x32   :  { %1453 = dma.done.wait [#allocation9], 1024  }
  0x33   :  { %1454 = vsyncadd [#allocation9], 4294966272  ;;  %v1269_v0 = vld [vmem:[#allocation5 + $0x78] sm:$0xff]   ;;  %v1273_v4 = vld [vmem:[#allocation5 + $0x70] sm:$0xff]   ;;  %vm1464_vm0 = vmmov 0   ;;  %s1466_s24 = smov [#allocation10]  }
  0x34   :  { %v1270_v1 = vld [vmem:[#allocation5 + $0xf8] sm:$0xff]   ;;  %1113 = vmatprep.subr.bf16.mxu0 %v1269_v0  ;;  %v1274_v5 = vld [vmem:[#allocation5 + $0xf0] sm:$0xff]   ;;  %v1277_v8 = vld [vmem:[#allocation5 + $0x68] sm:$0xff]   ;;  %s1013_s25 = sshll.u32 %s1466_s24, 4  ;;  %s1014_s25 = int_to_ptr.vmem [resolvable:$true] %s1013_s25 }
  0x35   :  { %v1271_v2 = vld [vmem:[#allocation5 + $0x38] sm:$0xff]   ;;  %1135 = vmatprep.subr.bf16.mxu1 %v1270_v1  ;;  %v1275_v6 = vld [vmem:[#allocation5 + $0x30] sm:$0xff]   ;;  %v1278_v9 = vld [vmem:[#allocation5 + $0xe8] sm:$0xff]   ;;  %p1434_p7 = scmp.lt.s32.totalorder %s1014_s25, %s1014_s25 }
  0x36   :  { %v1272_v3 = vld [vmem:[#allocation5 + $0xb8] sm:$0xff]   ;;  %1114 = vmatpush3.bf16.msra.mxu0 %v1271_v2  ;;  %v1276_v7 = vld [vmem:[#allocation5 + $0xb0] sm:$0xff]   ;;  %v1279_v10 = vld [vmem:[#allocation5 + $0x28] sm:$0xff]  }
  0x37   :  { %1136 = vmatpush3.bf16.msra.mxu1 %v1272_v3  ;;  %1115 = vmatprep.subr.bf16.mxu0 %v1273_v4  ;;  %v1280_v11 = vld [vmem:[#allocation5 + $0xa8] sm:$0xff]   ;;  %v1281_v12 = vld [vmem:[#allocation5 + $0x60] sm:$0xff]   ;;  %v1285_v16 = vld [vmem:[#allocation5 + $0x58] sm:$0xff]  }
  0x38   :  { %1137 = vmatprep.subr.bf16.mxu1 %v1274_v5  ;;  %v1282_v13 = vld [vmem:[#allocation5 + $0xe0] sm:$0xff]   ;;  %v1286_v17 = vld [vmem:[#allocation5 + $0xd8] sm:$0xff]   ;;  %v1289_v20 = vld [vmem:[#allocation5 + $0x50] sm:$0xff]  }
  0x39   :  { %v1283_v14 = vld [vmem:[#allocation5 + $0x20] sm:$0xff]   ;;  %v1287_v18 = vld [vmem:[#allocation5 + $0x18] sm:$0xff]   ;;  %v1290_v21 = vld [vmem:[#allocation5 + $0xd0] sm:$0xff]  }
  0x3a   :  { %1116 = vmatpush3.bf16.msra.mxu0 %v1275_v6  ;;  %v1284_v15 = vld [vmem:[#allocation5 + $0xa0] sm:$0xff]   ;;  %v1288_v19 = vld [vmem:[#allocation5 + $0x98] sm:$0xff]   ;;  %v1291_v22 = vld [vmem:[#allocation5 + $0x10] sm:$0xff]  }
  0x3b   :  { %1138 = vmatpush3.bf16.msra.mxu1 %v1276_v7  ;;  %1117 = vmatprep.subr.bf16.mxu0 %v1277_v8  ;;  %v1292_v23 = vld [vmem:[#allocation5 + $0x90] sm:$0xff]   ;;  %v1293_v24 = vld [vmem:[#allocation5 + $0x48] sm:$0xff]   ;;  %v1297_v28 = vld [vmem:[#allocation5 + $0x40] sm:$0xff]  }
  0x3c   :  { %1139 = vmatprep.subr.bf16.mxu1 %v1278_v9  ;;  %v1294_v25 = vld [vmem:[#allocation5 + $0xc8] sm:$0xff]   ;;  %v1298_v29 = vld [vmem:[#allocation5 + $0xc0] sm:$0xff]   ;;  %v84_v33 = vld [vmem:[#allocation2 + $0x18] sm:$0xff] }
  0x3d   :  { %v1295_v26 = vld [vmem:[#allocation5 + $0x8] sm:$0xff]   ;;  %v1299_v30 = vld [vmem:[#allocation5] sm:$0xff]   ;;  %v92_v36 = vpack.c.bf16 %v84_v33, %v84_v33  ;;  %v83_v38 = vld [vmem:[#allocation2 + $0x10] sm:$0xff] }
  0x3e   :  { %1118 = vmatpush3.bf16.msra.mxu0 %v1279_v10  ;;  %v1296_v27 = vld [vmem:[#allocation5 + $0x88] sm:$0xff]   ;;  %v1300_v31 = vld [vmem:[#allocation5 + $0x80] sm:$0xff]   ;;  %v91_v39 = vpack.c.bf16 %v83_v38, %v83_v38  ;;  %v1301_v40 = vld [vmem:[#allocation5 + $0x178] sm:$0xff]  }
  0x3f   :  { %1140 = vmatpush3.bf16.msra.mxu1 %v1280_v11  ;;  %1119 = vmatprep.subr.bf16.mxu0 %v1281_v12  ;;  %v82_v32 = vld [vmem:[#allocation2 + $0x8] sm:$0xff]  ;;  %v81_v34 = vld [vmem:[#allocation2] sm:$0xff]  ;;  %v1302_v41 = vld [vmem:[#allocation5 + $0x1f8] sm:$0xff]  }
  0x40   :  { %1141 = vmatprep.subr.bf16.mxu1 %v1282_v13  ;;  %v90_v35 = vpack.c.bf16 %v82_v32, %v82_v32  ;;  %v89_v37 = vpack.c.bf16 %v81_v34, %v81_v34  ;;  %688 = vmatprep.mubr.bf16.mxu1 %v92_v36  ;;  %v1303_v42 = vld [vmem:[#allocation5 + $0x138] sm:$0xff]   ;;  %v1305_v44 = vld [vmem:[#allocation5 + $0x170] sm:$0xff]   ;;  %v1309_v48 = vld [vmem:[#allocation5 + $0x168] sm:$0xff]  }
  0x41   :  { %v1304_v43 = vld [vmem:[#allocation5 + $0x1b8] sm:$0xff]   ;;  %v1306_v45 = vld [vmem:[#allocation5 + $0x1f0] sm:$0xff]   ;;  %v1310_v49 = vld [vmem:[#allocation5 + $0x1e8] sm:$0xff]  }
  0x42   :  { %1120 = vmatpush3.bf16.msra.mxu0 %v1283_v14  ;;  %648 = vmatprep.mubr.bf16.mxu0 %v90_v35  ;;  %v1307_v46 = vld [vmem:[#allocation5 + $0x130] sm:$0xff]   ;;  %v1311_v50 = vld [vmem:[#allocation5 + $0x128] sm:$0xff]   ;;  %v1313_v52 = vld [vmem:[#allocation5 + $0x160] sm:$0xff]  }
  0x43   :  { %1142 = vmatpush3.bf16.msra.mxu1 %v1284_v15  ;;  %1121 = vmatprep.subr.bf16.mxu0 %v1285_v16  ;;  %v1308_v47 = vld [vmem:[#allocation5 + $0x1b0] sm:$0xff]   ;;  %v1312_v51 = vld [vmem:[#allocation5 + $0x1a8] sm:$0xff]   ;;  %v1314_v53 = vld [vmem:[#allocation5 + $0x1e0] sm:$0xff]  }
  0x44   :  { %1143 = vmatprep.subr.bf16.mxu1 %v1286_v17  ;;  %v1315_v54 = vld [vmem:[#allocation5 + $0x120] sm:$0xff]   ;;  %v1317_v56 = vld [vmem:[#allocation5 + $0x158] sm:$0xff]   ;;  %v1321_v60 = vld [vmem:[#allocation5 + $0x150] sm:$0xff]   ;;  %v1463_v17 = vmov 0.0  }
  0x45   :  { %v1316_v55 = vld [vmem:[#allocation5 + $0x1a0] sm:$0xff]   ;;  %v1318_v57 = vld [vmem:[#allocation5 + $0x1d8] sm:$0xff]   ;;  %v1322_v61 = vld [vmem:[#allocation5 + $0x1d0] sm:$0xff]  }
  0x46   :  { %1122 = vmatpush3.bf16.msra.mxu0 %v1287_v18  ;;  %v1319_v58 = vld [vmem:[#allocation5 + $0x118] sm:$0xff]   ;;  %v1323_v62 = vld [vmem:[#allocation5 + $0x110] sm:$0xff]   ;;  %v1325_v0 = vld [vmem:[#allocation5 + $0x148] sm:$0xff]  }
  0x47   :  { %1144 = vmatpush3.bf16.msra.mxu1 %v1288_v19  ;;  %1123 = vmatprep.subr.bf16.mxu0 %v1289_v20  ;;  %v1320_v59 = vld [vmem:[#allocation5 + $0x198] sm:$0xff]   ;;  %v1324_v63 = vld [vmem:[#allocation5 + $0x190] sm:$0xff]   ;;  %v1326_v1 = vld [vmem:[#allocation5 + $0x1c8] sm:$0xff]  }
  0x48   :  { %1145 = vmatprep.subr.bf16.mxu1 %v1290_v21  ;;  %v1327_v2 = vld [vmem:[#allocation5 + $0x108] sm:$0xff]   ;;  %v1329_v4 = vld [vmem:[#allocation5 + $0x140] sm:$0xff]   ;;  %v88_v9 = vld [vmem:[#allocation2 + $0x38] sm:$0xff] }
  0x49   :  { %v1328_v3 = vld [vmem:[#allocation5 + $0x188] sm:$0xff]   ;;  %v1330_v5 = vld [vmem:[#allocation5 + $0x1c0] sm:$0xff]   ;;  %v96_v11 = vpack.c.bf16 %v88_v9, %v88_v9  ;;  %v87_v13 = vld [vmem:[#allocation2 + $0x30] sm:$0xff] }
  0x4a   :  { %1124 = vmatpush3.bf16.msra.mxu0 %v1291_v22  ;;  %v1331_v6 = vld [vmem:[#allocation5 + $0x100] sm:$0xff]   ;;  %v86_v8 = vld [vmem:[#allocation2 + $0x28] sm:$0xff]  ;;  %v95_v15 = vpack.c.bf16 %v87_v13, %v87_v13  ;;  %v1333_v16 = vld [vmem:[#allocation7 + $0x38] sm:$0xff]  }
  0x4b   :  { %1146 = vmatpush3.bf16.msra.mxu1 %v1292_v23  ;;  %1125 = vmatprep.subr.bf16.mxu0 %v1293_v24  ;;  %v1332_v7 = vld [vmem:[#allocation5 + $0x180] sm:$0xff]   ;;  %v94_v10 = vpack.c.bf16 %v86_v8, %v86_v8  ;;  %v1334_v18 = vld [vmem:[#allocation7 + $0x30] sm:$0xff]   ;;  %v1335_v19 = vld [vmem:[#allocation7 + $0x28] sm:$0xff]  }
  0x4c   :  { %1147 = vmatprep.subr.bf16.mxu1 %v1294_v25  ;;  %v85_v12 = vld [vmem:[#allocation2 + $0x20] sm:$0xff]  ;;  %v1337_v21 = vld [vmem:[#allocation7 + $0x18] sm:$0xff]   ;;  %v1338_v22 = vld [vmem:[#allocation7 + $0x10] sm:$0xff]  }
  0x4d   :  { %v93_v14 = vpack.c.bf16 %v85_v12, %v85_v12  ;;  %v1336_v20 = vld [vmem:[#allocation7 + $0x20] sm:$0xff]   ;;  %v1339_v23 = vld [vmem:[#allocation7 + $0x8] sm:$0xff]   ;;  %v1341_v25 = vld [vmem:[#allocation8 + $0x38] sm:$0xff]  }
  0x4e   :  { %1126 = vmatpush3.bf16.msra.mxu0 %v1295_v26  ;;  %v1340_v24 = vld [vmem:[#allocation7] sm:$0xff]   ;;  %v1342_v26 = vld [vmem:[#allocation8 + $0x30] sm:$0xff]  }
  0x4f   :  { %1148 = vmatpush3.bf16.msra.mxu1 %v1296_v27  ;;  %1127 = vmatprep.subr.bf16.mxu0 %v1297_v28  ;;  %v1343_v27 = vld [vmem:[#allocation8 + $0x28] sm:$0xff]   ;;  %v1344_v28 = vld [vmem:[#allocation8 + $0x20] sm:$0xff]  }
  0x50   :  { %1149 = vmatprep.subr.bf16.mxu1 %v1298_v29  ;;  %v1345_v29 = vld [vmem:[#allocation8 + $0x18] sm:$0xff]  }
  0x52   :  { %1128 = vmatpush3.bf16.msra.mxu0 %v1299_v30  ;;  %v1346_v30 = vld [vmem:[#allocation8 + $0x10] sm:$0xff]  }
  0x53   :  { %1150 = vmatpush3.bf16.msra.mxu1 %v1300_v31  ;;  %1157 = vmatprep.subr.bf16.mxu0 %v1301_v40  ;;  %v1347_v31 = vld [vmem:[#allocation8 + $0x8] sm:$0xff]  }
  0x54   :  { %1179 = vmatprep.subr.bf16.mxu1 %v1302_v41  ;;  %v1024_v41 = vld [vmem:[%s1542_s2] ss:$0 sm:$0xff] }
  0x55   :  { %649 = vmatmul.mubr.bf16.vlgmr.msra.gmra.mxu0 %v89_v37 }
  0x56   :  { %689 = vmatmul.mubr.bf16.vlgmr.msra.gmra.mxu1 %v91_v39  ;;  %1158 = vmatpush3.bf16.msra.mxu0 %v1303_v42 }
  0x57   :  { %1180 = vmatpush3.bf16.msra.mxu1 %v1304_v43  ;;  %1159 = vmatprep.subr.bf16.mxu0 %v1305_v44 }
  0x58   :  { %1181 = vmatprep.subr.bf16.mxu1 %v1306_v45  ;;  %728 = vmatprep.mubr.bf16.mxu0 %v94_v10 }
  0x59   :  { %768 = vmatprep.mubr.bf16.mxu1 %v96_v11 }
  0x5a   :  { %1160 = vmatpush3.bf16.msra.mxu0 %v1307_v46 }
  0x5b   :  { %1182 = vmatpush3.bf16.msra.mxu1 %v1308_v47  ;;  %1161 = vmatprep.subr.bf16.mxu0 %v1309_v48 }
  0x5c   :  { %1183 = vmatprep.subr.bf16.mxu1 %v1310_v49 }
  0x5e   :  { %1162 = vmatpush3.bf16.msra.mxu0 %v1311_v50 }
  0x5f   :  { %1184 = vmatpush3.bf16.msra.mxu1 %v1312_v51  ;;  %1163 = vmatprep.subr.bf16.mxu0 %v1313_v52 }
  0x60   :  { %1185 = vmatprep.subr.bf16.mxu1 %v1314_v53 }
  0x62   :  { %1164 = vmatpush3.bf16.msra.mxu0 %v1315_v54 }
  0x63   :  { %1186 = vmatpush3.bf16.msra.mxu1 %v1316_v55  ;;  %1165 = vmatprep.subr.bf16.mxu0 %v1317_v56 }
  0x64   :  { %1187 = vmatprep.subr.bf16.mxu1 %v1318_v57  ;;  %v1465_v57 = vmov 1.0|1.0  }
  0x66   :  { %1166 = vmatpush3.bf16.msra.mxu0 %v1319_v58  ;;  %v1348_v58 = vld [vmem:[#allocation8] sm:$0xff]  }
  0x67   :  { %1188 = vmatpush3.bf16.msra.mxu1 %v1320_v59  ;;  %1167 = vmatprep.subr.bf16.mxu0 %v1321_v60  ;;  %v1090_v59 = vld [vmem:[%s1544_s4] ss:$0 sm:$0xff]  ;;  %s1429_s4 = scalar_lea.vmem %s1014_s25, 128 }
  0x68   :  { %1189 = vmatprep.subr.bf16.mxu1 %v1322_v61  ;;  %p1430_p6 = scmp.ne.s32.totalorder %s1014_s25, %s1429_s4  ;;  %p1435_p8 = scmp.lt.s32.totalorder %s1429_s4, %s1429_s4 }
  0x6a   :  { %1168 = vmatpush3.bf16.msra.mxu0 %v1323_v62  ;;  %p1436_p9 = por %p1435_p8, %p1434_p7 }
  0x6b   :  { %1190 = vmatpush3.bf16.msra.mxu1 %v1324_v63  ;;  %1169 = vmatprep.subr.bf16.mxu0 %v1325_v0 }
  0x6c   :  { %1191 = vmatprep.subr.bf16.mxu1 %v1326_v1  ;;  %v1102_v1 = vld [vmem:[%s1546_s6] ss:$0 sm:$0xff]  ;;  %p1437_p10 = pnand %p1436_p9, %p1430_p6 }
  0x6e   :  { %1170 = vmatpush3.bf16.msra.mxu0 %v1327_v2 }
  0x6f   :  { %1192 = vmatpush3.bf16.msra.mxu1 %v1328_v3  ;;  %1171 = vmatprep.subr.bf16.mxu0 %v1329_v4 }
  0x70   :  { %1193 = vmatprep.subr.bf16.mxu1 %v1330_v5 }
  0x72   :  { %1172 = vmatpush3.bf16.msra.mxu0 %v1331_v6 }
  0x73   :  { %1194 = vmatpush3.bf16.msra.mxu1 %v1332_v7  ;;  %1219 = vmatprep.subr.bf16.mxu0 %v1463_v17 }
  0x74   :  { %1239 = vmatprep.subr.bf16.mxu1 %v1463_v17 }
  0x75   :  { %729 = vmatmul.mubr.bf16.vlgmr.msra.gmra.mxu0 %v93_v14 }
  0x76   :  { %769 = vmatmul.mubr.bf16.vlgmr.msra.gmra.mxu1 %v95_v15  ;;  %1220 = vmatpush3.bf16.msra.mxu0 %v1333_v16 }
  0x77   :  { %1221 = vmatprep.subr.bf16.mxu0 %v1463_v17  ;;  %1235 = vmatprep.mubr.msk.bf16.mxu0 %vm1464_vm0, %v1463_v17 }
  0x78   :  { %1255 = vmatprep.mubr.msk.bf16.mxu1 %vm1464_vm0, %v1463_v17  ;;  %1240 = vmatpush3.bf16.msra.mxu1 %v1341_v25 }
  0x79   :  { %1241 = vmatprep.subr.bf16.mxu1 %v1463_v17 }
  0x7a   :  { %1222 = vmatpush3.bf16.msra.mxu0 %v1334_v18 }
  0x7b   :  { %1223 = vmatprep.subr.bf16.mxu0 %v1463_v17 }
  0x7c   :  { %1242 = vmatpush3.bf16.msra.mxu1 %v1342_v26 }
  0x7d   :  { %1243 = vmatprep.subr.bf16.mxu1 %v1463_v17 }
  0x7e   :  { %1224 = vmatpush3.bf16.msra.mxu0 %v1335_v19 }
  0x7f   :  { %1225 = vmatprep.subr.bf16.mxu0 %v1463_v17 }
  0x80   :  { %1244 = vmatpush3.bf16.msra.mxu1 %v1343_v27 }
  0x81   :  { %1245 = vmatprep.subr.bf16.mxu1 %v1463_v17 }
  0x82   :  { %1226 = vmatpush3.bf16.msra.mxu0 %v1336_v20 }
  0x83   :  { %1227 = vmatprep.subr.bf16.mxu0 %v1463_v17 }
  0x84   :  { %1246 = vmatpush3.bf16.msra.mxu1 %v1344_v28 }
  0x85   :  { %1247 = vmatprep.subr.bf16.mxu1 %v1463_v17 }
  0x86   :  { %1228 = vmatpush3.bf16.msra.mxu0 %v1337_v21 }
  0x87   :  { %1229 = vmatprep.subr.bf16.mxu0 %v1463_v17 }
  0x88   :  { %1248 = vmatpush3.bf16.msra.mxu1 %v1345_v29 }
  0x89   :  { %1249 = vmatprep.subr.bf16.mxu1 %v1463_v17 }
  0x8a   :  { %1230 = vmatpush3.bf16.msra.mxu0 %v1338_v22 }
  0x8b   :  { %1231 = vmatprep.subr.bf16.mxu0 %v1463_v17 }
  0x8c   :  { %1250 = vmatpush3.bf16.msra.mxu1 %v1346_v30 }
  0x8d   :  { %1251 = vmatprep.subr.bf16.mxu1 %v1463_v17 }
  0x8e   :  { %1232 = vmatpush3.bf16.msra.mxu0 %v1339_v23 }
  0x8f   :  { %1233 = vmatprep.subr.bf16.mxu0 %v1463_v17 }
  0x90   :  { %1252 = vmatpush3.bf16.msra.mxu1 %v1347_v31 }
  0x91   :  { %1253 = vmatprep.subr.bf16.mxu1 %v1463_v17 }
  0x92   :  { %1234 = vmatpush3.bf16.msra.mxu0 %v1340_v24 }
  0x94   :  { %1254 = vmatpush3.bf16.msra.mxu1 %v1348_v58 }
 0x115   :  { %v1129_v32 = vpop.f32.mrf.mxu0 }
 0x116   :  { %v1151_v33 = vpop.f32.mrf.mxu1 }
 0x117   :  { %v1130_v34 = vpop.f32.mrf.mxu0 }
 0x118   :  { %v1152_v35 = vpop.f32.mrf.mxu1  ;;  %v1131_v40 = vadd.f32 %v1130_v34, %v1129_v32 }
 0x119   :  { %v1132_v36 = vpop.f32.mrf.mxu0  ;;  %v1153_v43 = vadd.f32 %v1152_v35, %v1151_v33 }
 0x11a   :  { %v1154_v37 = vpop.f32.mrf.mxu1  ;;  %v651_v42 = vadd.f32 %v1131_v40, %v1024_v41 }
 0x11b   :  { %v1133_v38 = vpop.f32.mrf.mxu0 }
 0x11c   :  { %v1155_v39 = vpop.f32.mrf.mxu1  ;;  %v691_v47 = vadd.f32 %v1153_v43, %v651_v42 }
 0x135   :  { %v1173_v44 = vpop.f32.mrf.mxu0 }
 0x136   :  { %v1195_v45 = vpop.f32.mrf.mxu1 }
 0x137   :  { %v1174_v46 = vpop.f32.mrf.mxu0 }
 0x138   :  { %v1175_v48 = vadd.f32 %v1174_v46, %v1173_v44  ;;  %v1196_v49 = vpop.f32.mrf.mxu1 }
 0x139   :  { %v1176_v50 = vpop.f32.mrf.mxu0  ;;  %v1197_v52 = vadd.f32 %v1196_v49, %v1195_v45 }
 0x13a   :  { %v731_v51 = vadd.f32 %v1175_v48, %v691_v47  ;;  %v1198_v53 = vpop.f32.mrf.mxu1 }
 0x13b   :  { %v1177_v54 = vpop.f32.mrf.mxu0 }
 0x13c   :  { %v771_v55 = vadd.f32 %v1197_v52, %v731_v51  ;;  %v1199_v56 = vpop.f32.mrf.mxu1 }
 0x13e   :  { %vm776_vm1 = vcmp.gt.f32.partialorder %v771_v55, 1.0 }
 0x13f   :  { %vm1099_vm2 = vmpackc.low %vm776_vm1, %vm776_vm1 }
 0x140   :  { %1236 = vmatmul.mubr.msk.bf16.vlgmr.msra.gmra.mxu0 %vm1099_vm2, %v1465_v57 }
 0x200   :  { %v885_v60 = vpop.f32.mrf.mxu0 }
 0x201   :  { %v886_v61 = vadd.f32 %v1090_v59, %v885_v60 }
 0x202   :  { %v1237_v62 = vpop.f32.mrf.mxu0 }
 0x203   :  { %vm891_vm3 = vcmp.gt.f32.partialorder %v886_v61, 1.0 }
 0x204   :  { %vm1111_vm4 = vmpackc.low %vm891_vm3, %vm891_vm3  ;;  %v888_v63 = vpop.f32.mrf.mxu0 }
 0x205   :  { %1256 = vmatmul.mubr.msk.bf16.vlgmr.msra.gmra.mxu1 %vm1111_vm4, %v1465_v57 }
 0x206   :  { %v1238_v0 = vpop.f32.mrf.mxu0 }
 0x2c5   :  { %v1000_v2 = vpop.f32.mrf.mxu1 }
 0x2c6   :  { %v1001_v3 = vadd.f32 %v1102_v1, %v1000_v2 }
 0x2c7   :  { %v1257_v4 = vpop.f32.mrf.mxu1 }
 0x2c8   :  { %1006 = vst [vmem:[#allocation10] sm:$0xff] %v1001_v3 }
 0x2c9   :  { %v1003_v5 = vpop.f32.mrf.mxu1 }
 0x2ca   :  { %1440 = shalt.err (!%p1437_p10)
}
 0x2cb   :  { %1016 = dma.vmem_to_hbm [thread:$0]  %s1014_s25, 128, %s1547_s7, [#allocation4]   ;;  %v1258_v6 = vpop.f32.mrf.mxu1 }
 0x2cc   :  { %1455 = dma.done.wait [#allocation4], 128  }
 0x2cd   :  { %1456 = vsyncadd [#allocation4], 4294967168 }
 0x2ce   :  { %1020 = vsyncpa [#allocation3], 1 }
 0x2cf   :  { %1021 = vsyncpa [#allocation6], 1 }
 0x2d0   :  { %1022 = vsyncpa [#allocation9], 1 }
 0x2d1   :  { %1023 = vsyncpa [#allocation4], 1 }

</bundles_post_ra>
